<compile_context>
chip_gen: v7x
topology: tpu7x:2x2x1
jax: 0.10.0
libtpu: 0.0.40
codegen_flags: <defaults>
</compile_context>

<pallas_src>
import jax
import jax.numpy as jnp
from jax import lax
from jax.experimental import pallas as pl
from jax.experimental.pallas import tpu as pltpu


# Contract the feature (last) dim of both operands: d = X_0 @ W^T on the MXU.
_NT_DIMS = (((1,), (1,)), ((), ()))


def _crossnet_kernel(x0_ref, w_ref, e_ref, c_ref, out_ref):
    # x0_ref : (TB, Dp)  batch tile of X_0
    # w_ref  : (L, Dp)   per-layer weight rows (resident constant)
    # e_ref  : (1, L)    e_i = (sum_{j<i} b_j) . w_i   (resident, f32)
    # c_ref  : (1, Dp)   c_L = sum_j b_j               (resident, f32)
    x0 = x0_ref[...]
    w = w_ref[...].astype(x0.dtype)

    # One MXU matmul replaces L per-layer cross-lane reductions.
    # (For bf16 inputs both operands are bf16, accumulation stays f32.)
    d = lax.dot_general(x0, w, _NT_DIMS,
                        preferred_element_type=jnp.float32)      # (TB, L)

    e = e_ref[...]                                                # (1, L) f32
    num_layers = d.shape[1]                                       # static, small

    # alpha_{i+1} = alpha_i * (1 + d_i) + e_i  -- O(TB*L) narrow VPU work.
    alpha = jnp.ones((x0.shape[0], 1), dtype=jnp.float32)
    for i in range(num_layers):
        alpha = alpha * (1.0 + d[:, i:i + 1]) + e[:, i:i + 1]

    # X_L = alpha_L * X_0 + c_L
    if out_ref.dtype == jnp.bfloat16:
        # bf16 elementwise path: 2x VPU throughput / half the vregs on v6e/v7x.
        out_ref[...] = (alpha.astype(jnp.bfloat16) * x0
                        + c_ref[...].astype(jnp.bfloat16))
    else:
        out_ref[...] = (alpha * x0.astype(jnp.float32)
                        + c_ref[...]).astype(out_ref.dtype)


def _pick_block_rows(batch, d_padded, in_bytes, out_bytes, budget_bytes=40 << 20):
    """Largest sublane-aligned batch tile that fits the VMEM budget.

    Per-row bytes ~= double-buffered in/out tiles + live f32 copies inside the
    kernel. Capped so the grid has >= 2 steps (v7x megacore) when batch allows.
    """
    per_row = d_padded * (2 * in_bytes + 2 * out_bytes + 8) + 64
    tb = (budget_bytes // per_row) // 8 * 8
    tb = max(8, min(int(tb), 1024))
    b8 = pl.cdiv(batch, 8) * 8
    if b8 >= 16:
        tb = min(tb, max(8, (b8 // 2) // 8 * 8))
    return min(tb, b8)


def crossnet(x0, weights, biases, *, block_rows=None):
    """Pallas TPU CrossNet forward.

    x0:      [B, D]  input features
    weights: [L, D]  cross-layer weight rows (Linear(D, 1).weight squeezed)
    biases:  [L, D]  cross-layer biases
    Returns X_L with shape [B, D] and x0's dtype.
    """
    B, D = x0.shape
    L, Dw = weights.shape
    assert Dw == D and biases.shape == (L, D)

    # ---- closed-form constants (tiny O(L*D) work, done once in the wrapper) ----
    wf = weights.astype(jnp.float32)
    bf = biases.astype(jnp.float32)
    csum = jnp.cumsum(bf, axis=0)                                     # (L, D)
    c_prefix = jnp.concatenate(
        [jnp.zeros((1, D), jnp.float32), csum[:-1]], axis=0)          # c_i, i<L
    # elementwise mul + sum keeps this exact f32 (no matmul precision ambiguity)
    e = jnp.sum(c_prefix * wf, axis=-1)[None, :]                      # (1, L)
    c_final = csum[-1][None, :]                                       # (1, D)

    # ---- lane-dense padding of the feature dim (multiple of 128) ----
    Dp = pl.cdiv(D, 128) * 128
    if Dp != D:
        pad_d = ((0, 0), (0, Dp - D))
        x0p = jnp.pad(x0, pad_d)
        wp = jnp.pad(wf, pad_d)
        cp = jnp.pad(c_final, pad_d)
    else:
        x0p, wp, cp = x0, wf, c_final

    # ---- VMEM-budgeted batch tile + sublane padding of the batch ----
    in_bytes = x0.dtype.itemsize
    out_bytes = in_bytes
    tb = block_rows if block_rows is not None else _pick_block_rows(
        B, Dp, in_bytes, out_bytes)
    Bp = pl.cdiv(B, tb) * tb
    if Bp != B:
        x0p = jnp.pad(x0p, ((0, Bp - B), (0, 0)))
    grid = (Bp // tb,)

    vmem_need = tb * Dp * (2 * in_bytes + 2 * out_bytes + 8) + 8 * (L + 2) * Dp
    vmem_limit = int(min(48 << 20, max(vmem_need + (4 << 20), 16 << 20)))

    grid_spec = pltpu.PrefetchScalarGridSpec(
        num_scalar_prefetch=0,
        grid=grid,
        in_specs=[
            pl.BlockSpec((tb, Dp), lambda i: (i, 0)),   # X_0 batch tile (pipelined)
            pl.BlockSpec((L, Dp), lambda i: (0, 0)),    # W rows   (resident const)
            pl.BlockSpec((1, L), lambda i: (0, 0)),     # e_i      (resident const)
            pl.BlockSpec((1, Dp), lambda i: (0, 0)),    # c_L      (resident const)
        ],
        out_specs=pl.BlockSpec((tb, Dp), lambda i: (i, 0)),
    )

    out = pl.pallas_call(
        _crossnet_kernel,
        grid_spec=grid_spec,
        out_shape=jax.ShapeDtypeStruct((Bp, Dp), x0.dtype),
        compiler_params=pltpu.CompilerParams(
            dimension_semantics=("parallel",),
            vmem_limit_bytes=vmem_limit,
        ),
    )(x0p, wp, e, cp)
    return out[:B, :D]


def _reference(x0, weights, biases):
    # Straightforward per-layer recurrence in f32; dot done as mul+sum so the
    # reference has no matmul-precision ambiguity.
    x0f = x0.astype(jnp.float32)
    x = x0f
    for i in range(weights.shape[0]):
        s = jnp.sum(x * weights[i].astype(jnp.float32), axis=-1, keepdims=True)
        x = x + (s * x0f + biases[i].astype(jnp.float32))
    return x.astype(x0.dtype)


if __name__ == "__main__":
    key = jax.random.PRNGKey(0)

    # ---- test 1: f32, small D (exercises the D->128 lane padding path) ----
    B, D, L = 8, 32, 3
    kx, kw, kb = jax.random.split(key, 3)
    # Snap x0 / weights to the bf16 grid so the MXU dot is exact regardless of
    # whether the f32 matmul uses full-precision or bf16 passes on this chip.
    x0 = jax.random.normal(kx, (B, D), dtype=jnp.float32)
    x0 = x0.astype(jnp.bfloat16).astype(jnp.float32)
    weights = (jax.random.normal(kw, (L, D), dtype=jnp.float32) * 0.1)
    weights = weights.astype(jnp.bfloat16).astype(jnp.float32)
    biases = jax.random.normal(kb, (L, D), dtype=jnp.float32) * 0.01

    out = crossnet(x0, weights, biases)
    jax.block_until_ready(out)
    ref = _reference(x0, weights, biases)
    assert out.shape == (B, D) and out.dtype == x0.dtype
    assert jnp.allclose(out, ref, atol=1e-4, rtol=1e-4), (
        float(jnp.max(jnp.abs(out - ref))))

    # ---- test 2: bf16, non-multiple-of-128 D, multi-step (parallel) grid ----
    B2, D2, L2 = 24, 160, 3
    k2 = jax.random.split(key, 6)
    x0b = jax.random.normal(k2[3], (B2, D2), dtype=jnp.float32).astype(jnp.bfloat16)
    w2 = jax.random.normal(k2[4], (L2, D2), dtype=jnp.float32) * 0.02
    b2 = jax.random.normal(k2[5], (L2, D2), dtype=jnp.float32) * 0.01

    out2 = crossnet(x0b, w2, b2)
    jax.block_until_ready(out2)
    ref2 = _reference(x0b, w2, b2).astype(jnp.float32)
    assert out2.shape == (B2, D2) and out2.dtype == jnp.bfloat16
    assert jnp.allclose(out2.astype(jnp.float32), ref2, atol=5e-2, rtol=5e-2), (
        float(jnp.max(jnp.abs(out2.astype(jnp.float32) - ref2))))

    print("KERNEL_OK")
</pallas_src>

<mosaic_0001>
module attributes {stable_mosaic.version = 11 : i64} {
  func.func @_crossnet_kernel(%arg0: i32, %arg1: memref<8x128xf32, #tpu.memory_space<vmem>>, %arg2: memref<3x128xf32, #tpu.memory_space<vmem>>, %arg3: memref<1x3xf32, #tpu.memory_space<vmem>>, %arg4: memref<1x128xf32, #tpu.memory_space<vmem>>, %arg5: memref<8x128xf32, #tpu.memory_space<vmem>>) attributes {dimension_semantics = [#tpu.dimension_semantics<parallel>], iteration_bounds = array<i64: 1>, scalar_prefetch = 0 : i64, scratch_operands = 0 : i64, tpu.core_type = #tpu.core_type<tc>, window_params = [{transform_indices = @transform_0, window_bounds = array<i64: 8, 128>}, {pipeline_mode = #tpu.pipeline_mode<synchronous>, transform_indices = @transform_1, window_bounds = array<i64: 3, 128>}, {pipeline_mode = #tpu.pipeline_mode<synchronous>, transform_indices = @transform_2, window_bounds = array<i64: 1, 3>}, {pipeline_mode = #tpu.pipeline_mode<synchronous>, transform_indices = @transform_3, window_bounds = array<i64: 1, 128>}, {transform_indices = @transform_4, window_bounds = array<i64: 8, 128>}]} {
    %c0 = arith.constant 0 : index
    %c0_0 = arith.constant 0 : index
    %0 = vector.load %arg1[%c0, %c0_0] : memref<8x128xf32, #tpu.memory_space<vmem>>, vector<8x128xf32>
    %c0_1 = arith.constant 0 : index
    %c0_2 = arith.constant 0 : index
    %1 = vector.load %arg2[%c0_1, %c0_2] : memref<3x128xf32, #tpu.memory_space<vmem>>, vector<3x128xf32>
    %cst = arith.constant dense<0.000000e+00> : vector<8x3xf32>
    %2 = tpu.matmul %0, %1, %cst {dimension_numbers = #tpu.dot_dimension_numbers<[1], [1], [0], [0], [0, 0, 1, 0], [], []>} : vector<8x128xf32>, vector<3x128xf32>, vector<8x3xf32> -> vector<8x3xf32>
    %c0_3 = arith.constant 0 : index
    %c0_4 = arith.constant 0 : index
    %3 = vector.load %arg3[%c0_3, %c0_4] : memref<1x3xf32, #tpu.memory_space<vmem>>, vector<1x3xf32>
    %cst_5 = arith.constant 1.000000e+00 : f32
    %4 = vector.broadcast %cst_5 : f32 to vector<8x1xf32>
    %5 = vector.extract_strided_slice %2 {offsets = [0, 0], sizes = [8, 1], strides = [1, 1]} : vector<8x3xf32> to vector<8x1xf32>
    %cst_6 = arith.constant 1.000000e+00 : f32
    %6 = vector.broadcast %cst_6 : f32 to vector<8x1xf32>
    %7 = arith.addf %6, %5 : vector<8x1xf32>
    %8 = arith.mulf %4, %7 : vector<8x1xf32>
    %9 = vector.extract_strided_slice %3 {offsets = [0, 0], sizes = [1, 1], strides = [1, 1]} : vector<1x3xf32> to vector<1x1xf32>
    %10 = vector.broadcast %9 : vector<1x1xf32> to vector<8x1xf32>
    %11 = arith.addf %8, %10 : vector<8x1xf32>
    %12 = vector.extract_strided_slice %2 {offsets = [0, 1], sizes = [8, 1], strides = [1, 1]} : vector<8x3xf32> to vector<8x1xf32>
    %cst_7 = arith.constant 1.000000e+00 : f32
    %13 = vector.broadcast %cst_7 : f32 to vector<8x1xf32>
    %14 = arith.addf %13, %12 : vector<8x1xf32>
    %15 = arith.mulf %11, %14 : vector<8x1xf32>
    %16 = vector.extract_strided_slice %3 {offsets = [0, 1], sizes = [1, 1], strides = [1, 1]} : vector<1x3xf32> to vector<1x1xf32>
    %17 = vector.broadcast %16 : vector<1x1xf32> to vector<8x1xf32>
    %18 = arith.addf %15, %17 : vector<8x1xf32>
    %19 = vector.extract_strided_slice %2 {offsets = [0, 2], sizes = [8, 1], strides = [1, 1]} : vector<8x3xf32> to vector<8x1xf32>
    %cst_8 = arith.constant 1.000000e+00 : f32
    %20 = vector.broadcast %cst_8 : f32 to vector<8x1xf32>
    %21 = arith.addf %20, %19 : vector<8x1xf32>
    %22 = arith.mulf %18, %21 : vector<8x1xf32>
    %23 = vector.extract_strided_slice %3 {offsets = [0, 2], sizes = [1, 1], strides = [1, 1]} : vector<1x3xf32> to vector<1x1xf32>
    %24 = vector.broadcast %23 : vector<1x1xf32> to vector<8x1xf32>
    %25 = arith.addf %22, %24 : vector<8x1xf32>
    %26 = vector.broadcast %25 : vector<8x1xf32> to vector<8x128xf32>
    %27 = arith.mulf %26, %0 : vector<8x128xf32>
    %c0_9 = arith.constant 0 : index
    %c0_10 = arith.constant 0 : index
    %28 = vector.load %arg4[%c0_9, %c0_10] : memref<1x128xf32, #tpu.memory_space<vmem>>, vector<1x128xf32>
    %29 = vector.broadcast %28 : vector<1x128xf32> to vector<8x128xf32>
    %30 = arith.addf %27, %29 : vector<8x128xf32>
    %c0_11 = arith.constant 0 : index
    %c0_12 = arith.constant 0 : index
    %31 = vector.load %arg5[%c0_11, %c0_12] : memref<8x128xf32, #tpu.memory_space<vmem>>, vector<8x128xf32>
    tpu.vector_store %arg5[%c0_11, %c0_12], %30 {strides = array<i32>} : memref<8x128xf32, #tpu.memory_space<vmem>>, vector<8x128xf32>,
    return
  }
  func.func @transform_0(%arg0: i32) -> (i32, i32) {
    %c0_i32 = arith.constant 0 : i32
    %c0_i32_0 = arith.constant 0 : i32
    return %arg0, %c0_i32 : i32, i32
  }
  func.func @transform_1(%arg0: i32) -> (i32, i32) {
    %c0_i32 = arith.constant 0 : i32
    %c0_i32_0 = arith.constant 0 : i32
    %c0_i32_1 = arith.constant 0 : i32
    return %c0_i32, %c0_i32_0 : i32, i32
  }
  func.func @transform_2(%arg0: i32) -> (i32, i32) {
    %c0_i32 = arith.constant 0 : i32
    %c0_i32_0 = arith.constant 0 : i32
    %c0_i32_1 = arith.constant 0 : i32
    return %c0_i32, %c0_i32_0 : i32, i32
  }
  func.func @transform_3(%arg0: i32) -> (i32, i32) {
    %c0_i32 = arith.constant 0 : i32
    %c0_i32_0 = arith.constant 0 : i32
    %c0_i32_1 = arith.constant 0 : i32
    return %c0_i32, %c0_i32_0 : i32, i32
  }
  func.func @transform_4(%arg0: i32) -> (i32, i32) {
    %c0_i32 = arith.constant 0 : i32
    %c0_i32_0 = arith.constant 0 : i32
    return %arg0, %c0_i32 : i32, i32
  }
}

</mosaic_0001>

<bundles_post_ra>
// kernel: tpu_custom_call.1
= control target key start
LH: loop header
LB: loop body
LE: loop exit
PB: predicated region body
PF: predicated region fallthrough
CT: control target
= control target key end

     0   :  { %9 = vsyncpa [#allocation3], 0  ;;  %s336_s0 = inlined_call_operand.hbm [shape: f32[8,128], index: 0, kind: input, shape index: {}]   ;;  %s337_s1 = inlined_call_operand.hbm [shape: f32[3,128], index: 1, kind: input, shape index: {}]   ;;  %s338_s2 = inlined_call_operand.vmem [shape: f32[1,3], index: 2, kind: input, shape index: {}]   ;;  %s339_s3 = inlined_call_operand.vmem [shape: f32[1,128], index: 3, kind: input, shape index: {}]   ;;  %s340_s4 = inlined_call_operand.hbm [shape: f32[8,128], index: 4, kind: output, shape index: {}]  }
   0x1   :  { %10 = vsyncpa [#allocation6], 0 }
   0x2   :  { %11 = vsyncpa [#allocation4], 0  ;;  %s261_s15 = smov [#allocation2]   ;;  %s262_s17 = smov [#allocation5]  }
   0x3   :  { %s18_s16 = sshll.u32 %s261_s15, 4  ;;  %s28_s18 = sshll.u32 %s262_s17, 4  ;;  %s19_s16 = int_to_ptr.vmem [resolvable:$true] %s18_s16  ;;  %s29_s18 = int_to_ptr.vmem [resolvable:$true] %s28_s18 }
   0x4   :  { %s189_s21 = scalar_lea.hbm %s336_s0, 128 }
   0x5   :  { %p190_p0 = scmp.ne.s32.totalorder %s336_s0, %s189_s21  ;;  %p193_p1 = scmp.lt.u32.totalorder %s189_s21, %s336_s0 }
   0x7   :  { %p195_p2 = pnand %p193_p1, %p190_p0 }
   0x9   :  { %198 = shalt.err (!%p195_p2)
}
   0xa   :  { %s199_s26 = scalar_lea.vmem %s19_s16, 128  ;;  %p204_p4 = scmp.lt.s32.totalorder %s19_s16, %s19_s16 }
   0xb   :  { %p200_p3 = scmp.ne.s32.totalorder %s19_s16, %s199_s26  ;;  %p205_p5 = scmp.lt.s32.totalorder %s199_s26, %s199_s26 }
   0xd   :  { %p206_p6 = por %p205_p5, %p204_p4 }
   0xf   :  { %p207_p7 = pnand %p206_p6, %p200_p3 }
  0x11   :  { %210 = shalt.err (!%p207_p7)
}
  0x12   :  { %21 = dma.hbm_to_vmem [thread:$0]  %s336_s0, 128, %s19_s16, [#allocation3]  }
  0x13   :  { %s211_s5 = scalar_lea.hbm %s337_s1, 64 }
  0x14   :  { %p212_p8 = scmp.ne.s32.totalorder %s337_s1, %s211_s5  ;;  %p215_p9 = scmp.lt.u32.totalorder %s211_s5, %s337_s1 }
  0x16   :  { %p217_p10 = pnand %p215_p9, %p212_p8 }
  0x18   :  { %220 = shalt.err (!%p217_p10)
}
  0x19   :  { %s221_s10 = scalar_lea.vmem %s29_s18, 64  ;;  %p226_p12 = scmp.lt.s32.totalorder %s29_s18, %s29_s18 }
  0x1a   :  { %p222_p11 = scmp.ne.s32.totalorder %s29_s18, %s221_s10  ;;  %p227_p13 = scmp.lt.s32.totalorder %s221_s10, %s221_s10 }
  0x1c   :  { %p228_p0 = por %p227_p13, %p226_p12 }
  0x1e   :  { %p229_p1 = pnand %p228_p0, %p222_p11 }
  0x20   :  { %232 = shalt.err (!%p229_p1)
}
  0x21   :  { %31 = dma.hbm_to_vmem [thread:$0]  %s337_s1, 64, %s29_s18, [#allocation6]  }
  0x22   :  { %255 = dma.done.wait [#allocation3], 128  }
  0x23   :  { %256 = vsyncadd [#allocation3], 4294967168 }
  0x24   :  { %257 = dma.done.wait [#allocation6], 64  }
  0x25   :  { %258 = vsyncadd [#allocation6], 4294967232  ;;  %v263_v0 = vmov 0.0   ;;  %vm264_vm0 = vmmov 0   ;;  %v43_v1 = vld [vmem:[#allocation5] sm:$0x7] }
  0x26   :  { %175 = vmatprep.subr.mxu0 %v263_v0  ;;  %177 = vmatprep.mubr.msk.f32.mxu0 %vm264_vm0, %v263_v0  ;;  %v42_v2 = vld [vmem:[#allocation2] sm:$0xff]  ;;  %v265_v3 = vmov 0   ;;  %s266_s1 = smov 126   ;;  %s267_s14 = smov 127  }
  0x27   :  { %176 = vmatpush3.xpose.msra.mxu0 %v43_v1  ;;  %188 = vset.pattern.permute.xlu0 %v265_v3  ;;  %v171_v5 = vld [vmem:[%s338_s2] ss:$0 sm:$0xff]  ;;  %s268_s16 = smov [#allocation7]  }
  0x28   :  { %v172_v17 = vld [vmem:[%s339_s3] ss:$0 sm:$0xff]  ;;  %s161_s17 = sshll.u32 %s268_s16, 4  ;;  %s162_s17 = int_to_ptr.vmem [resolvable:$true] %s161_s17 }
  0x29   :  { %s233_s18 = scalar_lea.vmem %s162_s17, 128  ;;  %p238_p3 = scmp.lt.s32.totalorder %s162_s17, %s162_s17 }
  0x2a   :  { %178 = vmatmul.mubr.f32.vlgmr.msra.gmra.mrb[0].mxu0 %v42_v2  ;;  %p234_p2 = scmp.ne.s32.totalorder %s162_s17, %s233_s18  ;;  %p239_p4 = scmp.lt.s32.totalorder %s233_s18, %s233_s18 }
  0x2c   :  { %p240_p5 = por %p239_p4, %p238_p3 }
  0x2e   :  { %p241_p6 = pnand %p240_p5, %p234_p2 }
  0xfd   :  { %v110_v4 = vpop.f32.mrb[0].mxu0 }
  0xfe   :  { %v115_v6 = vadd.f32 1.0, %v110_v4  ;;  %v179_v7 = vpop.f32.mrb[1].mxu0 }
 0x100   :  { %132 = vrot.lane.b32.xlu1 %v115_v6, %s266_s1  ;;  %124 = vrot.lane.b32.xlu0 %v115_v6, %s267_s14  ;;  %v122_v8 = vadd.f32 %v171_v5, %v115_v6 }
 0x104   :  { %128 = vrot.lane.b32.xlu0 %v171_v5, %s267_s14  ;;  %136 = vrot.lane.b32.xlu1 %v171_v5, %s266_s1 }
 0x172   :  { %v125_v9 = vpop.permute.xlu0 %124  ;;  %v133_v10 = vpop.permute.xlu1 %132 }
 0x173   :  { %v127_v11 = vmul.f32 %v125_v9, %v122_v8 }
 0x176   :  { %v129_v12 = vpop.permute.xlu0 %128  ;;  %v137_v14 = vpop.permute.xlu1 %136 }
 0x177   :  { %v131_v13 = vadd.f32 %v129_v12, %v127_v11 }
 0x179   :  { %v135_v15 = vmul.f32 %v133_v10, %v131_v13 }
 0x17b   :  { %v139_v16 = vadd.f32 %v137_v14, %v135_v15 }
 0x17d   :  { %142 = vperm.xlu0 %188, %v139_v16  }
 0x1fc   :  { %v143_v18 = vpop.permute.xlu0 %142 }
 0x1fd   :  { %v145_v19 = vmul.f32 %v143_v18, %v42_v2 }
 0x1ff   :  { %v153_v20 = vadd.f32 %v172_v17, %v145_v19 }
 0x201   :  { %154 = vst [vmem:[#allocation7] sm:$0xff] %v153_v20 }
 0x202   :  { %244 = shalt.err (!%p241_p6)
}
 0x203   :  { %s245_s21 = scalar_lea.hbm %s340_s4, 128 }
 0x204   :  { %p246_p7 = scmp.ne.s32.totalorder %s340_s4, %s245_s21  ;;  %p249_p8 = scmp.lt.u32.totalorder %s245_s21, %s340_s4 }
 0x206   :  { %p251_p9 = pnand %p249_p8, %p246_p7 }
 0x208   :  { %254 = shalt.err (!%p251_p9)
}
 0x209   :  { %164 = dma.vmem_to_hbm [thread:$0]  %s162_s17, 128, %s340_s4, [#allocation4]  }
 0x20a   :  { %259 = dma.done.wait [#allocation4], 128  }
 0x20b   :  { %260 = vsyncadd [#allocation4], 4294967168 }
 0x20c   :  { %168 = vsyncpa [#allocation3], 1 }
 0x20d   :  { %169 = vsyncpa [#allocation6], 1 }
 0x20e   :  { %170 = vsyncpa [#allocation4], 1 }

</bundles_post_ra>
